<compile_context>
chip_gen: v7x
topology: tpu7x:2x2x1
jax: 0.10.0
libtpu: 0.0.40
codegen_flags: <defaults>
</compile_context>

<pallas_src>
import functools

import jax
import jax.numpy as jnp
from jax.experimental import pallas as pl
from jax.experimental.pallas import tpu as pltpu

EPS = 1e-5
LANE = 128


def _round_up(n, m):
    return ((n + m - 1) // m) * m


def _pad2(a, rows, cols):
    return jnp.pad(a, ((0, rows - a.shape[0]), (0, cols - a.shape[1])))


# -----------------------------------------------------------------------------
# Fused kernel.  grid = (pass, batch_tile)
#   pass 0: linear1(+folded BN1) -> relu -> linear2 ; h kept in VMEM ; BN2 partial sums
#   pass 1: finalize BN2 affine (tile 0) ; bn2 -> relu -> final linear -> output
# -----------------------------------------------------------------------------
def _dqn_fused_kernel(x_ref, w1_ref, w2_ref, wf_ref, vecs_ref, bf_ref, o_ref,
                      h_sc, sum_sc, ssq_sc, aff2_sc,
                      *, valid_rows, tile_rows, n_tiles, o_vpu):
    p = pl.program_id(0)   # 0: forward to pre-BN2 h + stats, 1: BN2 -> relu -> final linear
    i = pl.program_id(1)   # batch tile

    @pl.when(jnp.logical_and(p == 0, i == 0))
    def _init_stats():
        sum_sc[...] = jnp.zeros_like(sum_sc)
        ssq_sc[...] = jnp.zeros_like(ssq_sc)

    @pl.when(p == 0)
    def _pass0():
        x = x_ref[...].astype(jnp.float32)              # (TB, F), features unpadded
        vecs = vecs_ref[...]
        b1 = vecs[0:1, :]                               # BN1-folded bias of linear1
        b2 = vecs[1:2, :]
        h1 = jnp.maximum(
            jnp.dot(x.astype(w1_ref.dtype), w1_ref[...],
                    preferred_element_type=jnp.float32) + b1, 0.0)
        h2 = jnp.dot(h1.astype(w2_ref.dtype), w2_ref[...],
                     preferred_element_type=jnp.float32) + b2
        h_sc[i] = h2                                    # stays in VMEM; no HBM round trip

        # b2-shifted partial sums for full-batch BN2 statistics.
        d = h2 - b2
        if n_tiles * tile_rows > valid_rows:            # static: padded batch rows exist
            row = (jax.lax.broadcasted_iota(jnp.int32, d.shape, 0) + i * tile_rows)
            d = jnp.where(row < valid_rows, d, 0.0)
        sum_sc[...] += jnp.sum(d, axis=0, keepdims=True)
        ssq_sc[...] += jnp.sum(d * d, axis=0, keepdims=True)

    @pl.when(jnp.logical_and(p == 1, i == 0))
    def _finalize_bn2():
        vecs = vecs_ref[...]
        b2, g2, be2 = vecs[1:2, :], vecs[2:3, :], vecs[3:4, :]
        inv_b = 1.0 / float(valid_rows)
        mu_d = sum_sc[...] * inv_b                      # E[h - b2]
        var2 = jnp.maximum(ssq_sc[...] * inv_b - mu_d * mu_d, 0.0)
        scale2 = g2 * jax.lax.rsqrt(var2 + EPS)
        shift2 = be2 - (mu_d + b2) * scale2             # mu2 = E[h] = E[h - b2] + b2
        aff2_sc[0:1, :] = scale2
        aff2_sc[1:2, :] = shift2

    @pl.when(p == 1)
    def _pass1():
        hn = jnp.maximum(h_sc[i] * aff2_sc[0:1, :] + aff2_sc[1:2, :], 0.0)
        if o_vpu:
            # OUT == 1: VPU multiply + lane reduction (no 128-lane-padded matmul/output).
            wf_row = vecs_ref[4:5, :]                   # (1, H_P)
            o = jnp.sum(hn * wf_row, axis=-1, keepdims=True) + bf_ref[...]
        else:
            o = jnp.dot(hn.astype(wf_ref.dtype), wf_ref[...],
                        preferred_element_type=jnp.float32) + bf_ref[...]
        o_ref[...] = o.astype(o_ref.dtype)


# -----------------------------------------------------------------------------
# Wrapper
# -----------------------------------------------------------------------------
def dqn_forward(x, params, *, tile_b=1024, use_bf16_weights=False):
    """x: (B, F) float32.  params: dict from build_params()."""
    B, F = x.shape
    H = params["w1"].shape[1]
    O = params["wf"].shape[1]
    H_P = _round_up(H, LANE)
    o_vpu = (O == 1)

    TB = min(_round_up(tile_b, 8), _round_up(B, 8))
    B_P = _round_up(B, TB)
    nt = B_P // TB

    w_dtype = jnp.bfloat16 if use_bf16_weights else jnp.float32

    # --- BN1 stats hoisted (full-batch, biased var) and folded into linear1 ---
    xf = x.astype(jnp.float32)
    mu1 = jnp.mean(xf, axis=0, keepdims=True)
    var1 = jnp.mean(jnp.square(xf - mu1), axis=0, keepdims=True)
    scale1 = params["g1"] * jax.lax.rsqrt(var1 + EPS)            # (1, F)
    shift1 = params["be1"] - mu1 * scale1                        # (1, F)
    w1f = scale1.reshape(F, 1) * params["w1"]                    # (F, H) row-scaled
    b1f = shift1 @ params["w1"] + params["b1"]                   # (1, H)

    # --- pack operands; only the hidden dim is padded to the 128-lane grain ---
    # NOTE: w2/wf/g2/be2 pads could be cached across calls (only w1f/b1f depend on
    #       the batch statistics); kept inline here for a self-contained wrapper.
    w1p = jnp.pad(w1f, ((0, 0), (0, H_P - H))).astype(w_dtype)              # (F, H_P)
    w2p = _pad2(params["w2"], H_P, H_P).astype(w_dtype)                     # (H_P, H_P)
    wfp = jnp.pad(params["wf"], ((0, H_P - H), (0, 0))).astype(w_dtype)     # (H_P, O)
    vec_rows = [b1f, params["b2"], params["g2"], params["be2"]]
    if o_vpu:
        vec_rows.append(params["wf"].T)                                     # (1, H)
    vecs = _pad2(jnp.concatenate(vec_rows, axis=0), len(vec_rows), H_P)     # (4|5, H_P)
    bf = params["bf"]                                                       # (1, O)

    # Pad only the batch dim of x (features stay unpadded: full-dim last block).
    xp = jnp.pad(xf, ((0, B_P - B), (0, 0))) if B_P != B else xf

    # --- VMEM budget: whole-batch h scratch + double-buffered tiles + weights ---
    bpw = 2 if use_bf16_weights else 4
    weight_bytes = ((int(w1p.size) + int(w2p.size) + int(wfp.size)) * bpw
                    + int(vecs.size) * 4 + int(bf.size) * 4)
    vmem_need = (B_P * H_P * 4 + 4 * H_P * 4
                 + 2 * (TB * F * 4 + TB * O * 4) + 2 * weight_bytes)
    # TODO(synk): for very large batches (h scratch beyond ~40 MiB, i.e. ~80k rows at
    #             H_P=128) fall back to a two-pass variant with h spilled to HBM (bf16).
    assert vmem_need <= 40 * 1024 * 1024, (
        f"fused DQN kernel needs ~{vmem_need / 2**20:.1f} MiB VMEM; reduce batch size")
    vmem_limit = None
    if vmem_need > 12 * 1024 * 1024:
        vmem_limit = min(int(vmem_need * 1.4) + (2 << 20), 60 << 20)

    flops = 2 * B_P * H_P * (F + H_P + O)
    bytes_accessed = int(xp.size) * 4 + weight_bytes + B_P * O * 4

    kernel = functools.partial(_dqn_fused_kernel, valid_rows=B, tile_rows=TB,
                               n_tiles=nt, o_vpu=o_vpu)

    out = pl.pallas_call(
        kernel,
        grid=(2, nt),      # (pass, batch tile); both carry cross-iteration state
        in_specs=[
            # x: full (unpadded) feature dim; parked on tile 0 during pass 1 (no re-DMA).
            pl.BlockSpec((TB, F), lambda p, i: (i * (1 - p), 0)),
            pl.BlockSpec((F, H_P), lambda p, i: (0, 0)),      # VMEM-resident weights
            pl.BlockSpec((H_P, H_P), lambda p, i: (0, 0)),
            pl.BlockSpec((H_P, O), lambda p, i: (0, 0)),
            pl.BlockSpec((vecs.shape[0], H_P), lambda p, i: (0, 0)),
            pl.BlockSpec((1, O), lambda p, i: (0, 0)),
        ],
        # Output is only written in pass 1; parked on block 0 during pass 0 so no
        # unwritten block is copied back before it is filled.
        out_specs=pl.BlockSpec((TB, O), lambda p, i: (i * p, 0)),
        out_shape=jax.ShapeDtypeStruct((B_P, O), jnp.float32),
        scratch_shapes=[
            pltpu.VMEM((nt, TB, H_P), jnp.float32),   # pre-BN2 h for the whole batch
            pltpu.VMEM((1, H_P), jnp.float32),        # sum(h - b2)
            pltpu.VMEM((1, H_P), jnp.float32),        # sum((h - b2)^2)
            pltpu.VMEM((2, H_P), jnp.float32),        # BN2 affine [scale2; shift2]
        ],
        compiler_params=pltpu.CompilerParams(
            # Cross-tile BN2 stats + pass-0 -> pass-1 dependency => sequential grid.
            # TODO(synk): v7x megacore would need a CMEM/core-barrier stats reduction.
            dimension_semantics=("arbitrary", "arbitrary"),
            vmem_limit_bytes=vmem_limit),
        cost_estimate=pl.CostEstimate(flops=int(flops), transcendentals=0,
                                      bytes_accessed=int(bytes_accessed)),
    )(xp, w1p, w2p, wfp, vecs, bf)

    return out[:B, :]


# -----------------------------------------------------------------------------
# Parameters & pure-JAX reference
# -----------------------------------------------------------------------------
def build_params(key, in_features, hidden, out_features=1):
    """Deterministic synthetic parameters (PyTorch-Linear-style uniform init)."""
    ks = jax.random.split(key, 6)

    def linear_init(k, fan_in, fan_out):
        bound = 1.0 / jnp.sqrt(fan_in)
        kw, kb = jax.random.split(k)
        # stored already transposed: (fan_in, fan_out)
        w = jax.random.uniform(kw, (fan_in, fan_out), jnp.float32, -bound, bound)
        b = jax.random.uniform(kb, (1, fan_out), jnp.float32, -bound, bound)
        return w, b

    w1, b1 = linear_init(ks[0], in_features, hidden)
    w2, b2 = linear_init(ks[1], hidden, hidden)
    wf, bf = linear_init(ks[2], hidden, out_features)
    return {
        "g1": jnp.ones((1, in_features), jnp.float32),
        "be1": jnp.zeros((1, in_features), jnp.float32),
        "w1": w1, "b1": b1,
        "w2": w2, "b2": b2,
        "g2": jnp.ones((1, hidden), jnp.float32),
        "be2": jnp.zeros((1, hidden), jnp.float32),
        "wf": wf, "bf": bf,
    }


def dqn_forward_ref(x, p):
    """Pure-JAX reference (full-batch BN, biased variance — PyTorch training mode)."""
    mu1 = x.mean(0, keepdims=True)
    var1 = ((x - mu1) ** 2).mean(0, keepdims=True)
    x = (x - mu1) / jnp.sqrt(var1 + EPS) * p["g1"] + p["be1"]
    h = jnp.maximum(x @ p["w1"] + p["b1"], 0.0)
    h = h @ p["w2"] + p["b2"]
    mu2 = h.mean(0, keepdims=True)
    var2 = ((h - mu2) ** 2).mean(0, keepdims=True)
    h = jnp.maximum((h - mu2) / jnp.sqrt(var2 + EPS) * p["g2"] + p["be2"], 0.0)
    return h @ p["wf"] + p["bf"]


if __name__ == "__main__":
    key = jax.random.PRNGKey(0)
    k_x, k_p = jax.random.split(key)

    B, IN, HID, OUT = 12, 16, 32, 1
    x = jax.random.normal(k_x, (B, IN), jnp.float32)
    params = build_params(k_p, IN, HID, OUT)

    # tile_b=8 forces 2 batch tiles -> exercises the two-pass grid, batch-row masking
    # and the cross-tile BN2 statistics accumulation even at this tiny size.
    fwd = jax.jit(functools.partial(dqn_forward, tile_b=8))
    out = jax.block_until_ready(fwd(x, params))

    ref = dqn_forward_ref(x, params)
    assert out.shape == (B, OUT)
    assert jnp.allclose(out, ref, atol=1e-4, rtol=1e-4), "mismatch vs reference"

    print("KERNEL_OK")
</pallas_src>

<mosaic_0001>
module attributes {stable_mosaic.version = 11 : i64} {
  func.func @_dqn_fused_kernel(%arg0: i32, %arg1: i32, %arg2: memref<8x16xf32, #tpu.memory_space<vmem>>, %arg3: memref<16x128xf32, #tpu.memory_space<vmem>>, %arg4: memref<128x128xf32, #tpu.memory_space<vmem>>, %arg5: memref<128x1xf32, #tpu.memory_space<vmem>>, %arg6: memref<5x128xf32, #tpu.memory_space<vmem>>, %arg7: memref<1x1xf32, #tpu.memory_space<vmem>>, %arg8: memref<8x1xf32, #tpu.memory_space<vmem>>, %arg9: memref<2x8x128xf32, #tpu.memory_space<vmem>>, %arg10: memref<1x128xf32, #tpu.memory_space<vmem>>, %arg11: memref<1x128xf32, #tpu.memory_space<vmem>>, %arg12: memref<2x128xf32, #tpu.memory_space<vmem>>) attributes {dimension_semantics = [#tpu.dimension_semantics<arbitrary>, #tpu.dimension_semantics<arbitrary>], iteration_bounds = array<i64: 2, 2>, scalar_prefetch = 0 : i64, scratch_operands = 4 : i64, tpu.core_type = #tpu.core_type<tc>, window_params = [{transform_indices = @transform_0, window_bounds = array<i64: 8, 16>}, {pipeline_mode = #tpu.pipeline_mode<synchronous>, transform_indices = @transform_1, window_bounds = array<i64: 16, 128>}, {pipeline_mode = #tpu.pipeline_mode<synchronous>, transform_indices = @transform_2, window_bounds = array<i64: 128, 128>}, {pipeline_mode = #tpu.pipeline_mode<synchronous>, transform_indices = @transform_3, window_bounds = array<i64: 128, 1>}, {pipeline_mode = #tpu.pipeline_mode<synchronous>, transform_indices = @transform_4, window_bounds = array<i64: 5, 128>}, {pipeline_mode = #tpu.pipeline_mode<synchronous>, transform_indices = @transform_5, window_bounds = array<i64: 1, 1>}, {transform_indices = @transform_6, window_bounds = array<i64: 8, 1>}]} {
    %c0_i32 = arith.constant 0 : i32
    %0 = arith.cmpi eq, %arg0, %c0_i32 : i32
    %c0_i32_0 = arith.constant 0 : i32
    %1 = arith.cmpi eq, %arg1, %c0_i32_0 : i32
    %2 = arith.andi %0, %1 : i1
    %3 = arith.extui %2 : i1 to i32
    %c0_i32_1 = arith.constant 0 : i32
    %4 = arith.cmpi ne, %3, %c0_i32_1 : i32
    scf.if %4 {
      %cst = arith.constant 0.000000e+00 : f32
      %16 = vector.broadcast %cst : f32 to vector<1x128xf32>
      %c0 = arith.constant 0 : index
      %c0_8 = arith.constant 0 : index
      %17 = vector.load %arg10[%c0, %c0_8] : memref<1x128xf32, #tpu.memory_space<vmem>>, vector<1x128xf32>
      tpu.vector_store %arg10[%c0, %c0_8], %16 {strides = array<i32>} : memref<1x128xf32, #tpu.memory_space<vmem>>, vector<1x128xf32>,
      %cst_9 = arith.constant 0.000000e+00 : f32
      %18 = vector.broadcast %cst_9 : f32 to vector<1x128xf32>
      %c0_10 = arith.constant 0 : index
      %c0_11 = arith.constant 0 : index
      %19 = vector.load %arg11[%c0_10, %c0_11] : memref<1x128xf32, #tpu.memory_space<vmem>>, vector<1x128xf32>
      tpu.vector_store %arg11[%c0_10, %c0_11], %18 {strides = array<i32>} : memref<1x128xf32, #tpu.memory_space<vmem>>, vector<1x128xf32>,
    } else {
    }
    %c0_i32_2 = arith.constant 0 : i32
    %5 = arith.cmpi eq, %arg0, %c0_i32_2 : i32
    %6 = arith.extui %5 : i1 to i32
    %c0_i32_3 = arith.constant 0 : i32
    %7 = arith.cmpi ne, %6, %c0_i32_3 : i32
    scf.if %7 {
      %c0 = arith.constant 0 : index
      %c0_8 = arith.constant 0 : index
      %16 = vector.load %arg2[%c0, %c0_8] : memref<8x16xf32, #tpu.memory_space<vmem>>, vector<8x16xf32>
      %c0_9 = arith.constant 0 : index
      %c0_10 = arith.constant 0 : index
      %17 = vector.load %arg6[%c0_9, %c0_10] : memref<5x128xf32, #tpu.memory_space<vmem>>, vector<5x128xf32>
      %18 = vector.extract_strided_slice %17 {offsets = [0, 0], sizes = [1, 128], strides = [1, 1]} : vector<5x128xf32> to vector<1x128xf32>
      %19 = vector.extract_strided_slice %17 {offsets = [1, 0], sizes = [1, 128], strides = [1, 1]} : vector<5x128xf32> to vector<1x128xf32>
      %c0_11 = arith.constant 0 : index
      %c0_12 = arith.constant 0 : index
      %20 = vector.load %arg3[%c0_11, %c0_12] : memref<16x128xf32, #tpu.memory_space<vmem>>, vector<16x128xf32>
      %cst = arith.constant dense<0.000000e+00> : vector<8x128xf32>
      %21 = tpu.matmul %16, %20, %cst {dimension_numbers = #tpu.dot_dimension_numbers<[1], [0], [0], [1], [0, 0, 1, 1], [], []>} : vector<8x16xf32>, vector<16x128xf32>, vector<8x128xf32> -> vector<8x128xf32>
      %22 = vector.broadcast %18 : vector<1x128xf32> to vector<8x128xf32>
      %23 = arith.addf %21, %22 : vector<8x128xf32>
      %cst_13 = arith.constant 0.000000e+00 : f32
      %24 = vector.broadcast %cst_13 : f32 to vector<8x128xf32>
      %25 = arith.maximumf %23, %24 : vector<8x128xf32>
      %c0_14 = arith.constant 0 : index
      %c0_15 = arith.constant 0 : index
      %26 = vector.load %arg4[%c0_14, %c0_15] : memref<128x128xf32, #tpu.memory_space<vmem>>, vector<128x128xf32>
      %cst_16 = arith.constant dense<0.000000e+00> : vector<8x128xf32>
      %27 = tpu.matmul %25, %26, %cst_16 {dimension_numbers = #tpu.dot_dimension_numbers<[1], [0], [0], [1], [0, 0, 1, 1], [], []>} : vector<8x128xf32>, vector<128x128xf32>, vector<8x128xf32> -> vector<8x128xf32>
      %28 = vector.broadcast %19 : vector<1x128xf32> to vector<8x128xf32>
      %29 = arith.addf %27, %28 : vector<8x128xf32>
      %30 = arith.index_cast %arg1 : i32 to index
      %c0_17 = arith.constant 0 : index
      %c0_18 = arith.constant 0 : index
      %31 = vector.load %arg9[%30, %c0_17, %c0_18] : memref<2x8x128xf32, #tpu.memory_space<vmem>>, vector<1x8x128xf32>
      %32 = vector.shape_cast %31 : vector<1x8x128xf32> to vector<8x128xf32>
      %33 = vector.shape_cast %29 : vector<8x128xf32> to vector<1x8x128xf32>
      tpu.vector_store %arg9[%30, %c0_17, %c0_18], %33 {strides = array<i32>} : memref<2x8x128xf32, #tpu.memory_space<vmem>>, vector<1x8x128xf32>,
      %34 = vector.broadcast %19 : vector<1x128xf32> to vector<8x128xf32>
      %35 = arith.subf %29, %34 : vector<8x128xf32>
      %36 = tpu.iota {dimensions = array<i32: 0>} : vector<8x128xi32>
      %c8_i32 = arith.constant 8 : i32
      %37 = arith.muli %arg1, %c8_i32 : i32
      %38 = vector.broadcast %37 : i32 to vector<8x128xi32>
      %39 = arith.addi %36, %38 : vector<8x128xi32>
      %c12_i32 = arith.constant 12 : i32
      %40 = vector.broadcast %c12_i32 : i32 to vector<8x128xi32>
      %41 = arith.cmpi slt, %39, %40 : vector<8x128xi32>
      %cst_19 = arith.constant 0.000000e+00 : f32
      %42 = vector.broadcast %cst_19 : f32 to vector<8x128xf32>
      %43 = arith.select %41, %35, %42 : vector<8x128xi1>, vector<8x128xf32>
      %c0_20 = arith.constant 0 : index
      %c0_21 = arith.constant 0 : index
      %44 = vector.load %arg10[%c0_20, %c0_21] : memref<1x128xf32, #tpu.memory_space<vmem>>, vector<1x128xf32>
      %cst_22 = arith.constant dense<0.000000e+00> : vector<128xf32>
      %45 = vector.multi_reduction <add>, %43, %cst_22 [0] : vector<8x128xf32> to vector<128xf32>
      %46 = vector.shape_cast %45 : vector<128xf32> to vector<1x128xf32>
      %47 = arith.addf %44, %46 : vector<1x128xf32>
      %c0_23 = arith.constant 0 : index
      %c0_24 = arith.constant 0 : index
      %48 = vector.load %arg10[%c0_23, %c0_24] : memref<1x128xf32, #tpu.memory_space<vmem>>, vector<1x128xf32>
      tpu.vector_store %arg10[%c0_23, %c0_24], %47 {strides = array<i32>} : memref<1x128xf32, #tpu.memory_space<vmem>>, vector<1x128xf32>,
      %c0_25 = arith.constant 0 : index
      %c0_26 = arith.constant 0 : index
      %49 = vector.load %arg11[%c0_25, %c0_26] : memref<1x128xf32, #tpu.memory_space<vmem>>, vector<1x128xf32>
      %50 = arith.mulf %43, %43 : vector<8x128xf32>
      %cst_27 = arith.constant dense<0.000000e+00> : vector<128xf32>
      %51 = vector.multi_reduction <add>, %50, %cst_27 [0] : vector<8x128xf32> to vector<128xf32>
      %52 = vector.shape_cast %51 : vector<128xf32> to vector<1x128xf32>
      %53 = arith.addf %49, %52 : vector<1x128xf32>
      %c0_28 = arith.constant 0 : index
      %c0_29 = arith.constant 0 : index
      %54 = vector.load %arg11[%c0_28, %c0_29] : memref<1x128xf32, #tpu.memory_space<vmem>>, vector<1x128xf32>
      tpu.vector_store %arg11[%c0_28, %c0_29], %53 {strides = array<i32>} : memref<1x128xf32, #tpu.memory_space<vmem>>, vector<1x128xf32>,
    } else {
    }
    %c1_i32 = arith.constant 1 : i32
    %8 = arith.cmpi eq, %arg0, %c1_i32 : i32
    %c0_i32_4 = arith.constant 0 : i32
    %9 = arith.cmpi eq, %arg1, %c0_i32_4 : i32
    %10 = arith.andi %8, %9 : i1
    %11 = arith.extui %10 : i1 to i32
    %c0_i32_5 = arith.constant 0 : i32
    %12 = arith.cmpi ne, %11, %c0_i32_5 : i32
    scf.if %12 {
      %c0 = arith.constant 0 : index
      %c0_8 = arith.constant 0 : index
      %16 = vector.load %arg6[%c0, %c0_8] : memref<5x128xf32, #tpu.memory_space<vmem>>, vector<5x128xf32>
      %17 = vector.extract_strided_slice %16 {offsets = [1, 0], sizes = [1, 128], strides = [1, 1]} : vector<5x128xf32> to vector<1x128xf32>
      %18 = vector.extract_strided_slice %16 {offsets = [2, 0], sizes = [1, 128], strides = [1, 1]} : vector<5x128xf32> to vector<1x128xf32>
      %19 = vector.extract_strided_slice %16 {offsets = [3, 0], sizes = [1, 128], strides = [1, 1]} : vector<5x128xf32> to vector<1x128xf32>
      %c0_9 = arith.constant 0 : index
      %c0_10 = arith.constant 0 : index
      %20 = vector.load %arg10[%c0_9, %c0_10] : memref<1x128xf32, #tpu.memory_space<vmem>>, vector<1x128xf32>
      %cst = arith.constant 0.0833333358 : f32
      %21 = vector.broadcast %cst : f32 to vector<1x128xf32>
      %22 = arith.mulf %20, %21 : vector<1x128xf32>
      %c0_11 = arith.constant 0 : index
      %c0_12 = arith.constant 0 : index
      %23 = vector.load %arg11[%c0_11, %c0_12] : memref<1x128xf32, #tpu.memory_space<vmem>>, vector<1x128xf32>
      %cst_13 = arith.constant 0.0833333358 : f32
      %24 = vector.broadcast %cst_13 : f32 to vector<1x128xf32>
      %25 = arith.mulf %23, %24 : vector<1x128xf32>
      %26 = arith.mulf %22, %22 : vector<1x128xf32>
      %27 = arith.subf %25, %26 : vector<1x128xf32>
      %cst_14 = arith.constant 0.000000e+00 : f32
      %28 = vector.broadcast %cst_14 : f32 to vector<1x128xf32>
      %29 = arith.maximumf %27, %28 : vector<1x128xf32>
      %cst_15 = arith.constant 9.99999974E-6 : f32
      %30 = vector.broadcast %cst_15 : f32 to vector<1x128xf32>
      %31 = arith.addf %29, %30 : vector<1x128xf32>
      %32 = math.rsqrt %31 : vector<1x128xf32>
      %33 = arith.mulf %18, %32 : vector<1x128xf32>
      %34 = arith.addf %22, %17 : vector<1x128xf32>
      %35 = arith.mulf %34, %33 : vector<1x128xf32>
      %36 = arith.subf %19, %35 : vector<1x128xf32>
      %c0_16 = arith.constant 0 : index
      %c0_17 = arith.constant 0 : index
      %37 = vector.load %arg12[%c0_16, %c0_17] : memref<2x128xf32, #tpu.memory_space<vmem>>, vector<1x128xf32>
      tpu.vector_store %arg12[%c0_16, %c0_17], %33 {strides = array<i32>} : memref<2x128xf32, #tpu.memory_space<vmem>>, vector<1x128xf32>,
      %c1 = arith.constant 1 : index
      %c0_18 = arith.constant 0 : index
      %38 = vector.load %arg12[%c1, %c0_18] : memref<2x128xf32, #tpu.memory_space<vmem>>, vector<1x128xf32>
      tpu.vector_store %arg12[%c1, %c0_18], %36 {strides = array<i32>} : memref<2x128xf32, #tpu.memory_space<vmem>>, vector<1x128xf32>,
    } else {
    }
    %c1_i32_6 = arith.constant 1 : i32
    %13 = arith.cmpi eq, %arg0, %c1_i32_6 : i32
    %14 = arith.extui %13 : i1 to i32
    %c0_i32_7 = arith.constant 0 : i32
    %15 = arith.cmpi ne, %14, %c0_i32_7 : i32
    scf.if %15 {
      %16 = arith.index_cast %arg1 : i32 to index
      %c0 = arith.constant 0 : index
      %c0_8 = arith.constant 0 : index
      %17 = vector.load %arg9[%16, %c0, %c0_8] : memref<2x8x128xf32, #tpu.memory_space<vmem>>, vector<1x8x128xf32>
      %18 = vector.shape_cast %17 : vector<1x8x128xf32> to vector<8x128xf32>
      %c0_9 = arith.constant 0 : index
      %c0_10 = arith.constant 0 : index
      %19 = vector.load %arg12[%c0_9, %c0_10] : memref<2x128xf32, #tpu.memory_space<vmem>>, vector<1x128xf32>
      %20 = vector.broadcast %19 : vector<1x128xf32> to vector<8x128xf32>
      %21 = arith.mulf %18, %20 : vector<8x128xf32>
      %c1 = arith.constant 1 : index
      %c0_11 = arith.constant 0 : index
      %22 = vector.load %arg12[%c1, %c0_11] : memref<2x128xf32, #tpu.memory_space<vmem>>, vector<1x128xf32>
      %23 = vector.broadcast %22 : vector<1x128xf32> to vector<8x128xf32>
      %24 = arith.addf %21, %23 : vector<8x128xf32>
      %cst = arith.constant 0.000000e+00 : f32
      %25 = vector.broadcast %cst : f32 to vector<8x128xf32>
      %26 = arith.maximumf %24, %25 : vector<8x128xf32>
      %c4 = arith.constant 4 : index
      %c0_12 = arith.constant 0 : index
      %27 = vector.load %arg6[%c4, %c0_12] : memref<5x128xf32, #tpu.memory_space<vmem>>, vector<1x128xf32>
      %28 = vector.broadcast %27 : vector<1x128xf32> to vector<8x128xf32>
      %29 = arith.mulf %26, %28 : vector<8x128xf32>
      %cst_13 = arith.constant dense<0.000000e+00> : vector<8xf32>
      %30 = vector.multi_reduction <add>, %29, %cst_13 [1] : vector<8x128xf32> to vector<8xf32>
      %31 = vector.shape_cast %30 : vector<8xf32> to vector<8x1xf32>
      %c0_14 = arith.constant 0 : index
      %c0_15 = arith.constant 0 : index
      %32 = vector.load %arg7[%c0_14, %c0_15] : memref<1x1xf32, #tpu.memory_space<vmem>>, vector<1x1xf32>
      %33 = vector.broadcast %32 : vector<1x1xf32> to vector<8x1xf32>
      %34 = arith.addf %31, %33 : vector<8x1xf32>
      %c0_16 = arith.constant 0 : index
      %c0_17 = arith.constant 0 : index
      %35 = vector.load %arg8[%c0_16, %c0_17] : memref<8x1xf32, #tpu.memory_space<vmem>>, vector<8x1xf32>
      tpu.vector_store %arg8[%c0_16, %c0_17], %34 {strides = array<i32>} : memref<8x1xf32, #tpu.memory_space<vmem>>, vector<8x1xf32>,
    } else {
    }
    return
  }
  func.func @transform_0(%arg0: i32, %arg1: i32) -> (i32, i32) {
    %c1_i32 = arith.constant 1 : i32
    %0 = arith.subi %c1_i32, %arg0 : i32
    %1 = arith.muli %arg1, %0 : i32
    %c0_i32 = arith.constant 0 : i32
    %c0_i32_0 = arith.constant 0 : i32
    return %1, %c0_i32 : i32, i32
  }
  func.func @transform_1(%arg0: i32, %arg1: i32) -> (i32, i32) {
    %c0_i32 = arith.constant 0 : i32
    %c0_i32_0 = arith.constant 0 : i32
    %c0_i32_1 = arith.constant 0 : i32
    return %c0_i32, %c0_i32_0 : i32, i32
  }
  func.func @transform_2(%arg0: i32, %arg1: i32) -> (i32, i32) {
    %c0_i32 = arith.constant 0 : i32
    %c0_i32_0 = arith.constant 0 : i32
    %c0_i32_1 = arith.constant 0 : i32
    return %c0_i32, %c0_i32_0 : i32, i32
  }
  func.func @transform_3(%arg0: i32, %arg1: i32) -> (i32, i32) {
    %c0_i32 = arith.constant 0 : i32
    %c0_i32_0 = arith.constant 0 : i32
    %c0_i32_1 = arith.constant 0 : i32
    return %c0_i32, %c0_i32_0 : i32, i32
  }
  func.func @transform_4(%arg0: i32, %arg1: i32) -> (i32, i32) {
    %c0_i32 = arith.constant 0 : i32
    %c0_i32_0 = arith.constant 0 : i32
    %c0_i32_1 = arith.constant 0 : i32
    return %c0_i32, %c0_i32_0 : i32, i32
  }
  func.func @transform_5(%arg0: i32, %arg1: i32) -> (i32, i32) {
    %c0_i32 = arith.constant 0 : i32
    %c0_i32_0 = arith.constant 0 : i32
    %c0_i32_1 = arith.constant 0 : i32
    return %c0_i32, %c0_i32_0 : i32, i32
  }
  func.func @transform_6(%arg0: i32, %arg1: i32) -> (i32, i32) {
    %0 = arith.muli %arg1, %arg0 : i32
    %c0_i32 = arith.constant 0 : i32
    %c0_i32_0 = arith.constant 0 : i32
    return %0, %c0_i32 : i32, i32
  }
}

</mosaic_0001>

<bundles_post_ra>
// kernel: dqn_forward.1
= control target key start
LH: loop header
LB: loop body
LE: loop exit
PB: predicated region body
PF: predicated region fallthrough
CT: control target
= control target key end

     0   :  { %s906_s23 = smov 0   ;;  %s908_s24 = smov 0   ;;  %s1042_s0 = inlined_call_operand.vmem [shape: f32[16,16], index: 0, kind: input, shape index: {}]   ;;  %s1043_s1 = inlined_call_operand.vmem [shape: f32[16,128], index: 1, kind: input, shape index: {}]   ;;  %s1044_s2 = inlined_call_operand.vmem [shape: f32[128,128], index: 2, kind: input, shape index: {}]   ;;  %s1045_s3 = inlined_call_operand.vmem [shape: f32[128,1], index: 3, kind: input, shape index: {}]   ;;  %s1046_s4 = inlined_call_operand.vmem [shape: f32[5,128], index: 4, kind: input, shape index: {}]   ;;  %s1047_s5 = inlined_call_operand.<no memory space> [shape: f32[1,1], index: 5, kind: input, shape index: {}]   ;;  %s1048_s6 = inlined_call_operand.vmem [shape: f32[16,1], index: 6, kind: output, shape index: {}]  }
   0x1   :  { %v11_v0 = vstv %s1047_s5  ;;  %s910_s25 = smov 0   ;;  %s912_s3 = smov 0  }
   0x2   :  { %12 = vst [vmem:[#allocation6] sm:$0x1] %v11_v0  ;;  %s914_s26 = smov 0  }
   0x3 LB: > { %s27_s5 = sadd.s32 1, %s853_s25  ;;  %s30_s27 = sadd.s32 1, %s857_s3  ;;  %s861_s26 = sphi %s914_s26, %s18_s26   ;;  %s857_s3 = sphi %s912_s3, %s1052_s3   ;;  %s853_s25 = sphi %s910_s25, %s1051_s25   ;;  %s849_s24 = sphi %s908_s24, %s1050_s24   ;;  %s845_s23 = sphi %s906_s23, %s1049_s23  }
   0x4   : > { %p28_p0 = scmp.ge.s32.totalorder %s27_s5, 2  ;;  %p673_p1 = scmp.ge.s32.totalorder %s861_s26, 1 }
   0x5   : > { %p235_p2 = scmp.lt.s32.totalorder %s861_s26, 5 }
   0x6   : > { %s1054_s5 = smov (%p28_p0, %s27_s5), 0  ;;  %s1056_s27 = smov (!%p28_p0, %s30_s27), %s857_s3 }
   0x7   : > { %p236_p3 = pnand %p673_p1, %p235_p2  ;;  %p32_p4 = scmp.ge.s32.totalorder %s1056_s27, 2 }
   0x8   : > { %s266_s28 = ssub.s32 (!%p236_p3), 1, %s849_s24  ;;  %s274_s29 = smul.u32 (!%p236_p3), %s845_s23, %s849_s24 }
   0x9   : > { %s1058_s27 = smov (%p32_p4, %s1056_s27), 0  ;;  %239 = sbr.rel (%p236_p3) target bundleno = 684 (0x2ac), region = 44 }
   0xa   : > { %s267_s30 = smul.u32 (!%p236_p3), %s845_s23, %s266_s28  ;;  %p280_p5 = scmp.eq.s32.totalorder (!%p236_p3), %s849_s24, 0 }
   0xb   : > { %p275_p6 = scmp.lt.s32.totalorder (!%p236_p3), %s274_s29, 1  ;;  %p281_p7 = scmp.eq.s32.totalorder (!%p236_p3), %s845_s23, 0 }
   0xc   : > { %p268_p8 = scmp.lt.s32.totalorder (!%p236_p3), %s267_s30, 1 }
   0xd   : > { %p282_p9 = pnand (!%p236_p3), %p281_p7, %p280_p5 }
  0x10   : > { %s1060_s29 = smov (!%p275_p6, %s274_s29), 1  ;;  %s1062_s30 = smov (!%p268_p8, %s267_s30), 1 }
  0x11   : > { %s675_s7 = sshll.u32 %s1060_s29, 3  ;;  %s674_s8 = sshll.u32 %s1062_s30, 3  ;;  %v863_v1 = vmov (!%p282_p9), 0.0  }
  0x12   : > { %s951_s11 = scalar_lea.vmem %s1048_s6, %s675_s7  ;;  %s271_s14 = scalar_lea.vmem %s1042_s0, %s674_s8  ;;  %286 = vst [vmem:[#allocation3] sm:$0x1] (!%p282_p9), %v863_v1  ;;  %287 = vst [vmem:[#allocation4] sm:$0x1] (!%p282_p9), %v863_v1 }
  0x13   : > { %285 = sbr.rel (%p282_p9) target bundleno = 26 (0x1a), region = 48 }
  0x1a PF: > { %p676_p10 = scmp.ne.s32.totalorder %s849_s24, 0 }
  0x1b   : > { %v293_v2 = vld [vmem:[%s1043_s1] sm:$0xff] (!%p676_p10)  ;;  %v294_v3 = vld [vmem:[%s1043_s1 + $0x8] sm:$0xff] (!%p676_p10)  ;;  %v864_v4 = vmov (!%p676_p10), 0.0|0.0   ;;  %vm865_vm0 = vmmov (!%p676_p10), 0   ;;  %v866_v6 = vmov (!%p676_p10), 0.0   ;;  %v376_v9 = vld [vmem:[%s1044_s2 + $0x10] sm:$0xff] (!%p676_p10)  ;;  %v295_v32 = vlaneseq (!%p676_p10) }
  0x1c   : > { %290 = sbr.rel (%p676_p10) target bundleno = 483 (0x1e3), region = 52  ;;  %749 = vmatprep.subr.bf16.mxu0 (!%p676_p10), %v864_v4  ;;  %v750_v5 = vpack.c.bf16 (!%p676_p10), %v294_v3, %v293_v2  ;;  %711 = vmatprep.mubr.msk.f32.mxu0 (!%p676_p10), %vm865_vm0, %v866_v6  ;;  %v374_v7 = vld [vmem:[%s1044_s2] sm:$0xff] (!%p676_p10)  ;;  %v375_v8 = vld [vmem:[%s1044_s2 + $0x8] sm:$0xff] (!%p676_p10)  ;;  %v377_v11 = vld [vmem:[%s1044_s2 + $0x18] sm:$0xff] (!%p676_p10)  ;;  %vm299_vm1 = vcmask (!%p676_p10), 130048   ;;  %s678_s17 = sshll.u32 (!%p676_p10), %s845_s23, 3 }
  0x1d   : > { %752 = vmatprep.subr.bf16.mxu1 (!%p676_p10), %v864_v4  ;;  %v753_v10 = vpack.c.bf16 (!%p676_p10), %v375_v8, %v374_v7  ;;  %746 = vmatprep.mubr.msk.f32.mxu1 (!%p676_p10), %vm865_vm0, %v866_v6  ;;  %v291_v12 = vld [vmem:[%s271_s14] sm:$0xff] (!%p676_p10)  ;;  %v756_v13 = vpack.c.bf16 (!%p676_p10), %v377_v11, %v376_v9  ;;  %v379_v15 = vld [vmem:[%s1044_s2 + $0x28] sm:$0xff] (!%p676_p10)  ;;  %v380_v17 = vld [vmem:[%s1044_s2 + $0x30] sm:$0xff] (!%p676_p10)  ;;  %v296_v33 = vshrl.u32 (!%p676_p10), %v295_v32, 7  ;;  %v470_v42 = vstv (!%p676_p10), %s678_s17  ;;  %s465_s18 = scalar_lea.vmem (!%p676_p10), [#allocation2], %s678_s17 }
  0x1e   : > { %751 = vmatpush3.bf16.msra.mxu0 (!%p676_p10), %v750_v5  ;;  %v378_v14 = vld [vmem:[%s1044_s2 + $0x20] sm:$0xff] (!%p676_p10)  ;;  %v381_v18 = vld [vmem:[%s1044_s2 + $0x38] sm:$0xff] (!%p676_p10)  ;;  %v383_v21 = vld [vmem:[%s1044_s2 + $0x48] sm:$0xff] (!%p676_p10) }
  0x1f   : > { %754 = vmatpush3.bf16.msra.mxu1 (!%p676_p10), %v753_v10  ;;  %v759_v16 = vpack.c.bf16 (!%p676_p10), %v379_v15, %v378_v14  ;;  %v762_v19 = vpack.c.bf16 (!%p676_p10), %v381_v18, %v380_v17  ;;  %v382_v20 = vld [vmem:[%s1044_s2 + $0x40] sm:$0xff] (!%p676_p10)  ;;  %v384_v23 = vld [vmem:[%s1044_s2 + $0x50] sm:$0xff] (!%p676_p10)  ;;  %v385_v24 = vld [vmem:[%s1044_s2 + $0x58] sm:$0xff] (!%p676_p10)  ;;  %v297_v34 = vsub.s32 (!%p676_p10), 0, %v296_v33  ;;  %v392_v41 = vsub.s32 (!%p676_p10), 1, %v296_v33 }
  0x20   : > { %755 = vmatprep.subr.bf16.mxu1 (!%p676_p10), %v864_v4  ;;  %v765_v22 = vpack.c.bf16 (!%p676_p10), %v383_v21, %v382_v20  ;;  %v768_v25 = vpack.c.bf16 (!%p676_p10), %v385_v24, %v384_v23  ;;  %v386_v26 = vld [vmem:[%s1044_s2 + $0x60] sm:$0xff] (!%p676_p10)  ;;  %v387_v27 = vld [vmem:[%s1044_s2 + $0x68] sm:$0xff] (!%p676_p10)  ;;  %v388_v29 = vld [vmem:[%s1044_s2 + $0x70] sm:$0xff] (!%p676_p10)  ;;  %v471_v44 = vadd.s32 (!%p676_p10), %v470_v42, %v296_v33 }
  0x21   : > { %712 = vmatmul.mubr.msk.f32.vlgmr.msra.gmra.mrb[0].mxu0 (!%p676_p10), %vm299_vm1, %v291_v12  ;;  %v771_v28 = vpack.c.bf16 (!%p676_p10), %v387_v27, %v386_v26  ;;  %v389_v30 = vld [vmem:[%s1044_s2 + $0x78] sm:$0xff] (!%p676_p10)  ;;  %v292_v35 = vld [vmem:[%s1046_s4] sm:$0x1f] (!%p676_p10)  ;;  %v474_v60 = vld [vmem:[#allocation3] sm:$0x1] (!%p676_p10) }
  0x22   : > { %v774_v31 = vpack.c.bf16 (!%p676_p10), %v389_v30, %v388_v29  ;;  %v298_v36 = vrot.slane (!%p676_p10), %v292_v35, %v297_v34  ;;  %v393_v43 = vrot.slane (!%p676_p10), %v292_v35, %v392_v41  ;;  %vm472_vm2 = vcmp.lt.s32.totalorder (!%p676_p10), %v471_v44, 12  ;;  %v483_v63 = vld [vmem:[#allocation4] sm:$0x1] (!%p676_p10) }
  0x23   : > { %757 = vmatpush3.bf16.msra.mxu1 %v756_v13 }
  0x24   : > { %758 = vmatprep.subr.bf16.mxu1 %v864_v4 }
  0x27   : > { %760 = vmatpush3.bf16.msra.mxu1 %v759_v16 }
  0x28   : > { %761 = vmatprep.subr.bf16.mxu1 %v864_v4 }
  0x2b   : > { %763 = vmatpush3.bf16.msra.mxu1 %v762_v19 }
  0x2c   : > { %764 = vmatprep.subr.bf16.mxu1 %v864_v4 }
  0x2f   : > { %766 = vmatpush3.bf16.msra.mxu1 %v765_v22 }
  0x30   : > { %767 = vmatprep.subr.bf16.mxu1 %v864_v4 }
  0x33   : > { %769 = vmatpush3.bf16.msra.mxu1 %v768_v25 }
  0x34   : > { %770 = vmatprep.subr.bf16.mxu1 %v864_v4 }
  0x37   : > { %772 = vmatpush3.bf16.msra.mxu1 %v771_v28 }
  0x38   : > { %773 = vmatprep.subr.bf16.mxu1 %v864_v4 }
  0x3b   : > { %775 = vmatpush3.bf16.msra.mxu1 %v774_v31 }
  0xf4   : > { %v369_v37 = vpop.f32.mrb[0].mxu0 }
  0xf5   : > { %v370_v38 = vadd.f32 %v369_v37, %v298_v36  ;;  %v713_v39 = vpop.f32.mrb[1].mxu0 }
  0xf7   : > { %v373_v40 = vmax.f32 %v370_v38, 0.0 }
  0xf9   : > { %747 = vmatmul.mubr.f32.vlgmr.msra.gmra.mrb[0].mxu1 %v373_v40 }
 0x1cc   : > { %v460_v45 = vpop.f32.mrb[0].mxu1 }
 0x1cd   : > { %v461_v46 = vadd.f32 %v460_v45, %v393_v43  ;;  %v748_v47 = vpop.f32.mrb[1].mxu1 }
 0x1cf   : > { %466 = vst [vmem:[%s465_s18] sm:$0xff] %v461_v46  ;;  %v467_v48 = vsub.f32 %v461_v46, %v393_v43 }
 0x1d1   : > { %v473_v49 = vsel %vm472_vm2, %v467_v48, 0.0 }
 0x1d2   : > { %v475_v50 = vrot.slane %v473_v49, 4  ;;  %v484_v51 = vmul.f32 %v473_v49, %v473_v49 }
 0x1d4   : > { %v476_v52 = vadd.f32 %v475_v50, %v473_v49  ;;  %v485_v53 = vrot.slane %v484_v51, 4 }
 0x1d6   : > { %v477_v54 = vrot.slane %v476_v52, 2  ;;  %v486_v55 = vadd.f32 %v485_v53, %v484_v51 }
 0x1d8   : > { %v478_v56 = vadd.f32 %v477_v54, %v476_v52  ;;  %v487_v57 = vrot.slane %v486_v55, 2 }
 0x1da   : > { %v479_v58 = vrot.slane %v478_v56, 1  ;;  %v488_v59 = vadd.f32 %v487_v57, %v486_v55 }
 0x1dc   : > { %v480_v61 = vadd.f32 %v479_v58, %v478_v56  ;;  %v489_v62 = vrot.slane %v488_v59, 1 }
 0x1de   : > { %v481_v0 = vadd.f32 %v480_v61, %v474_v60  ;;  %v490_v1 = vadd.f32 %v489_v62, %v488_v59 }
 0x1e0   : > { %482 = vst [vmem:[#allocation3] sm:$0x1] %v481_v0  ;;  %v491_v2 = vadd.f32 %v490_v1, %v483_v63 }
 0x1e2   : > { %492 = vst [vmem:[#allocation4] sm:$0x1] %v491_v2 }
 0x1e3 PF: > { %p493_p11 = scmp.eq.s32.totalorder %s849_s24, 1 }
 0x1e5   : > { %p494_p12 = pnand %p493_p11, %p281_p7 }
 0x1e6   : > { %v867_v8 = vmov (!%p494_p12), 1966171168   ;;  %v509_v11 = vlaneseq (!%p494_p12)  ;;  %v498_v17 = vld [vmem:[%s1046_s4] sm:$0x1f] (!%p494_p12) }
 0x1e7   : > { %497 = sbr.rel (%p494_p12) target bundleno = 526 (0x20e), region = 56  ;;  %v499_v3 = vld [vmem:[#allocation3] sm:$0x1] (!%p494_p12)  ;;  %v517_v9 = vunpack.c.l.s4 (!%p494_p12), %v867_v8 }
 0x1e8   : > { %v500_v5 = vmul.f32 (!%p494_p12), 0.083333336, %v499_v3  ;;  %v510_v15 = vshrl.u32 (!%p494_p12), %v509_v11, 7 }
 0x1e9   : > { %v501_v4 = vld [vmem:[#allocation4] sm:$0x1] (!%p494_p12)  ;;  %v518_v13 = vunpack.c.0.s8 (!%p494_p12), %v517_v9 }
 0x1ea   : > { %v502_v6 = vmul.f32 (!%p494_p12), 0.083333336, %v501_v4  ;;  %v503_v7 = vmul.f32 (!%p494_p12), %v500_v5, %v500_v5  ;;  %v511_v19 = vsub.s32 (!%p494_p12), 0, %v510_v15 }
 0x1eb   : > { %v521_v16 = vsub.s32 (!%p494_p12), %v518_v13, %v510_v15 }
 0x1ec   : > { %v504_v10 = vsub.f32 (!%p494_p12), %v502_v6, %v503_v7 }
 0x1ed   : > { %v522_v18 = vrot.slane (!%p494_p12), %v498_v17, %v521_v16 }
 0x1ee   : > { %v505_v12 = vmax.f32 %v504_v10, 0.0 }
 0x1ef   : > { %v523_v20 = vcombine.high %v522_v18, %v522_v18 }
 0x1f0   : > { %v506_v14 = vadd.f32 1e-05, %v505_v12 }
 0x1f1   : > { %v530_v24 = vrot.slane %v523_v20, %v521_v16 }
 0x1f2   : > { %821 = vrsqrt.f32 %v506_v14 }
 0x1f3   : > { %v532_v27 = vadd.f32 %v530_v24, %v500_v5 }
 0x1fc   : > { %v822_v21 = vpop.eup %821 }
 0x1fd   : > { %v512_v22 = vrot.slane %v822_v21, %v511_v19 }
 0x1ff   : > { %v514_v23 = vmul.f32 %v512_v22, %v498_v17 }
 0x201   : > { %v540_v25 = vrot.slane %v514_v23, %v521_v16  ;;  %558 = vst [vmem:[#allocation5 - $0x2] sm:$0x4] %v514_v23 }
 0x203   : > { %v547_v26 = vrot.slane %v540_v25, %v521_v16 }
 0x205   : > { %v548_v28 = vcombine.high %v547_v26, %v547_v26 }
 0x207   : > { %v550_v29 = vmul.f32 %v548_v28, %v532_v27 }
 0x209   : > { %v555_v30 = vrot.slane %v550_v29, %v511_v19 }
 0x20b   : > { %v557_v31 = vsub.f32 %v498_v17, %v555_v30 }
 0x20d   : > { %559 = vst [vmem:[#allocation5 - $0x2] sm:$0x8] %v557_v31 }
 0x20e PF: > { %p679_p13 = scmp.ne.s32.totalorder %s849_s24, 1 }
 0x20f   : > { %s680_s21 = sshll.u32 (!%p679_p13), %s845_s23, 3  ;;  %v681_v32 = vld [vmem:[#allocation5] ss:$0 sm:$0xff] (!%p679_p13)  ;;  %v683_v37 = vld [vmem:[%s1046_s4 + $0x4] ss:$0 sm:$0xff] (!%p679_p13)  ;;  %vm595_vm3 = vcmask (!%p679_p13), 7168  }
 0x210   : > { %562 = sbr.rel (%p679_p13) target bundleno = 684 (0x2ac), region = 60  ;;  %s564_s22 = scalar_lea.vmem (!%p679_p13), [#allocation2], %s680_s21  ;;  %v684_v40 = vld [vmem:[#allocation6] ss:$0 sm:$0xff] (!%p679_p13) }
 0x211   : > { %v565_v33 = vld [vmem:[%s564_s22] sm:$0xff] (!%p679_p13) }
 0x212   : > { %v571_v35 = vmul.f32 (!%p679_p13), %v681_v32, %v565_v33 }
 0x214   : > { %v682_v34 = vld [vmem:[#allocation5 + $0x1] ss:$0 sm:$0xff] (!%p679_p13) }
 0x215   : > { %v577_v36 = vadd.f32 (!%p679_p13), %v682_v34, %v571_v35 }
 0x217   : > { %v578_v38 = vmax.f32 %v577_v36, 0.0 }
 0x219   : > { %v584_v39 = vmul.f32 %v683_v37, %v578_v38 }
 0x21b   : > { %585 = vadd.xlane.f32.xlu0 %v584_v39 }
 0x2a8   : > { %v586_v41 = vpop.xlane.xlu0 %585 }
 0x2a9   : > { %v594_v42 = vadd.f32 %v684_v40, %v586_v41 }
 0x2ab   : > { %596 = vst.msk [vmem:[%s951_s11] sm:$0xff] %vm595_vm3, %v594_v42 }
 0x2ac PF: > { %s18_s26 = sadd.s32 1, %s861_s26   ;;  %s1049_s23 = smov %s853_s25 }
 0x2ad   : > { %p15_p0 = scmp.ge.s32.totalorder %s18_s26, 6   ;;  %s1050_s24 = smov %s857_s3 }
 0x2ae   : > { %s1051_s25 = smov %s1054_s5  ;;  %s1052_s3 = smov %s1058_s27 }
 0x2af   :  { %17 = sbr.rel (!%p15_p0) target bundleno = 3 (0x3), region = 92 }

</bundles_post_ra>
